<compile_context>
chip_gen: v7x
topology: tpu7x:2x2x1
jax: 0.10.0
libtpu: 0.0.40
codegen_flags: <defaults>
</compile_context>

<pallas_src>
import functools
import math

import jax
import jax.numpy as jnp
import numpy as np
from jax import lax
from jax.experimental import pallas as pl
from jax.experimental.pallas import tpu as pltpu

_CLAMP = 1e-22
_BIG = 3.0e38   # stands in for torch's "max()+1" diagonal mask inside the min
_EPS = 1e-12


# ----------------------------------------------------------------------------
# host-side scalar helpers (resolved at trace time)
# ----------------------------------------------------------------------------
def cal_gamma(v: float) -> float:
    # scipy.special.gamma((v+1)/2) / (sqrt(v*pi) * scipy.special.gamma(v/2))
    return math.exp(math.lgamma((v + 1.0) / 2.0) - math.lgamma(v / 2.0)) / math.sqrt(
        v * math.pi
    )


def _similarity_folded(dist_rho, v, gamma, pw):
    """UMAPSimilarity elementwise map with the nested pow folded.

    torch:  pow(gamma * pow(1 + d/v, -(v+1)/2) * sqrt(2*3.14), pw)
        ==  gamma**pw * (2*3.14)**(pw/2) * pow(1 + d*(1/v), -pw*(v+1)/2)
    (3.14 -- not pi -- intentionally mirrors the PyTorch source.)
    v / gamma / pw are Python scalars: the branch resolves at trace time and
    only one exp/log pair hits the EUP per element.
    """
    if v > 500:
        return jnp.exp((-float(pw)) * dist_rho)
    const = float((gamma * math.sqrt(2.0 * 3.14)) ** pw)
    expo = float(-pw * (v + 1.0) / 2.0)
    return const * jnp.power(1.0 + dist_rho * (1.0 / v), expo)


def _pick_row_tile(rows, row_bytes, *, max_rows=256, budget_bytes=512 * 1024):
    """Largest multiple of 8 that divides `rows`, bounded by max_rows and a
    per-block VMEM budget.  Falls back to the full dim (always a legal block)
    when no such tile exists (tiny / oddly sized arrays)."""
    cap = min(max_rows, rows, max(8, budget_bytes // max(row_bytes, 1)))
    best = None
    t = 8
    while t <= cap:
        if rows % t == 0:
            best = t
        t += 8
    return best if best is not None else rows


# ----------------------------------------------------------------------------
# kernel 1: dis_P row stripe + fused nearest-neighbour distance (nnd)
# ----------------------------------------------------------------------------
def _dist_nnd_kernel(x_blk_ref, x_all_ref, xsq_col_ref, xsq_row_ref,
                     dis_ref, nnd_ref, *, aug_near_rate):
    """One (tm, N) stripe of the squared-euclidean distance matrix of `data`,
    plus nnd = min over the stripe's rows / augNearRate.

    Row-min equals torch's min(dim=0) because the distance matrix is symmetric
    by construction (commutative adds + identical MXU contraction order for
    (i,j) and (j,i))."""
    tm, n = dis_ref.shape
    i_blk = pl.program_id(0)
    mm = lax.dot_general(
        x_blk_ref[...], x_all_ref[...],
        dimension_numbers=(((1,), (1,)), ((), ())),      # NT: contract feature dim
        preferred_element_type=jnp.float32,
    )                                                    # (tm, N)
    d = jnp.maximum(xsq_col_ref[...] + xsq_row_ref[...] - 2.0 * mm, _CLAMP)
    rows_g = i_blk * tm + lax.broadcasted_iota(jnp.int32, (tm, n), 0)
    cols_g = lax.broadcasted_iota(jnp.int32, (tm, n), 1)
    diag = rows_g == cols_g
    dis_ref[...] = jnp.where(diag, _CLAMP, d)
    nnd_ref[...] = (
        jnp.min(jnp.where(diag, _BIG, d), axis=1, keepdims=True) / aug_near_rate
    )


def dist_p_and_nnd(data, aug_near_rate):
    n, d_in = data.shape
    xsq = jnp.sum(data * data, axis=1)
    tm = _pick_row_tile(n, row_bytes=n * 4)
    kern = functools.partial(_dist_nnd_kernel, aug_near_rate=float(aug_near_rate))
    # TODO(synk): for very large N*D the resident full-x RHS should be K/row
    # tiled as well; fine for typical DMT batch sizes.
    return pl.pallas_call(
        kern,
        grid=(n // tm,),
        out_shape=(jax.ShapeDtypeStruct((n, n), jnp.float32),
                   jax.ShapeDtypeStruct((n, 1), jnp.float32)),
        in_specs=[
            pl.BlockSpec((tm, d_in), lambda i: (i, 0)),   # x rows of this stripe
            pl.BlockSpec((n, d_in), lambda i: (0, 0)),    # all of x (RHS of NT matmul)
            pl.BlockSpec((tm, 1), lambda i: (i, 0)),      # ||x||^2 of these rows
            pl.BlockSpec((1, n), lambda i: (0, 0)),       # ||x||^2 as a row vector
        ],
        out_specs=(pl.BlockSpec((tm, n), lambda i: (i, 0)),
                   pl.BlockSpec((tm, 1), lambda i: (i, 0))),
        compiler_params=pltpu.CompilerParams(
            dimension_semantics=("parallel",),
            vmem_limit_bytes=48 * 1024 * 1024,
        ),
    )(data, data, xsq[:, None], xsq[None, :])


# ----------------------------------------------------------------------------
# kernel 2: P similarity (augmented (2N,2N) block), row-striped
# ----------------------------------------------------------------------------
def _p_sim_kernel(disp_ref, nndc_ref, nndr_ref, rho_r_ref, sig_r_ref,
                  rho_c_ref, sig_c_ref, out_ref, *, v, gamma, pw):
    """One (tm, 2N) stripe of P.

    disInput[i, j] = dis_P[i mod N, j mod N] + nnd[i mod N]*[i>=N]
                                             + nnd[j mod N]*[j>=N]
    so each quadrant is a broadcast add on the same dis_P stripe (no concats).
    Pij.T at this stripe comes from the same (symmetric) distance tile with
    rho/sigma applied column-wise instead of row-wise (no transposes)."""
    tm, n = disp_ref.shape            # n == N (half of the output width)
    nb_half = n // tm                 # row-blocks per half
    i_blk = pl.program_id(0)

    d = disp_ref[...]                                    # (tm, N)
    bottom = (i_blk >= nb_half).astype(jnp.float32)      # stripe in bottom half?
    d_base = d + bottom * nndc_ref[...]                  # + nnd[row] if bottom half

    rho_r = rho_r_ref[...]                               # (tm, 1)
    inv_sig_r = 1.0 / sig_r_ref[...]                     # (tm, 1)
    nnd_cols = nndr_ref[...]                             # (1, N)

    for h in range(2):                                   # left / right column halves
        dh = d_base if h == 0 else d_base + nnd_cols
        rho_c = rho_c_ref[:, h * n:(h + 1) * n]          # (1, N) rho of the columns
        inv_sig_c = 1.0 / sig_c_ref[:, h * n:(h + 1) * n]
        a_f = jnp.maximum((dh - rho_r) * inv_sig_r, 0.0)   # Pij orientation
        a_b = jnp.maximum((dh - rho_c) * inv_sig_c, 0.0)   # Pij.T orientation
        p_f = _similarity_folded(a_f, v, gamma, pw)
        p_b = _similarity_folded(a_b, v, gamma, pw)
        out_ref[:, h * n:(h + 1) * n] = p_f + p_b - p_f * p_b


def similarity_P(dis_p, nnd_col, rho, sigma, *, v, gamma, pw):
    n = dis_p.shape[0]
    m = 2 * n
    tm = _pick_row_tile(n, row_bytes=m * 4)
    if tm % 8 != 0:
        # TODO(synk): N with no multiple-of-8 divisor would need a padded fallback.
        raise NotImplementedError("similarity_P expects N to have a multiple-of-8 divisor")
    nbh = n // tm
    if nbh == 1:
        half_map = lambda i: (0, 0)
    else:
        half_map = lambda i: (i % nbh, 0)

    nnd_row = jnp.transpose(nnd_col)        # (1, N)
    rho_row = jnp.transpose(rho)            # (1, 2N)
    sigma_row = jnp.transpose(sigma)        # (1, 2N)

    kern = functools.partial(_p_sim_kernel, v=float(v), gamma=float(gamma), pw=pw)
    return pl.pallas_call(
        kern,
        grid=(m // tm,),
        out_shape=jax.ShapeDtypeStruct((m, m), jnp.float32),
        in_specs=[
            pl.BlockSpec((tm, n), half_map),             # dis_P stripe (rows mod N)
            pl.BlockSpec((tm, 1), half_map),             # nnd of these rows
            pl.BlockSpec((1, n), lambda i: (0, 0)),      # nnd as a row (columns)
            pl.BlockSpec((tm, 1), lambda i: (i, 0)),     # rho of these output rows
            pl.BlockSpec((tm, 1), lambda i: (i, 0)),     # sigma of these output rows
            pl.BlockSpec((1, m), lambda i: (0, 0)),      # rho as a row (columns)
            pl.BlockSpec((1, m), lambda i: (0, 0)),      # sigma as a row (columns)
        ],
        out_specs=pl.BlockSpec((tm, m), lambda i: (i, 0)),
        compiler_params=pltpu.CompilerParams(
            dimension_semantics=("parallel",),
            vmem_limit_bytes=48 * 1024 * 1024,
        ),
    )(dis_p, nnd_col, nnd_row, rho, sigma, rho_row, sigma_row)


# ----------------------------------------------------------------------------
# kernel 3: fused dis_latent + batch-hot distance + Q + two-way divergence
# ----------------------------------------------------------------------------
def _q_loss_kernel(lat_blk_ref, lat_all_ref, lsq_col_ref, lsq_row_ref,
                   bh_blk_ref, bh_all_ref, bsq_col_ref, bsq_row_ref,
                   p_ref, dis_q_ref, q_ref, loss_ref, *, v, gamma, pw, batch_rate):
    """One (tm, M) stripe of dis_Q and Q, with the two distance matrices and
    the two-way-divergence partial sum fused in (no extra HBM round trips).

    dis_Q is symmetric, so Q = Pij + Pij.T - Pij*Pij.T == 2*Pij - Pij**2
    elementwise -- no transpose needed."""
    tm, m = dis_q_ref.shape
    i_blk = pl.program_id(0)
    rows_g = i_blk * tm + lax.broadcasted_iota(jnp.int32, (tm, m), 0)
    cols_g = lax.broadcasted_iota(jnp.int32, (tm, m), 1)
    diag = rows_g == cols_g

    nt = (((1,), (1,)), ((), ()))
    mm_l = lax.dot_general(lat_blk_ref[...], lat_all_ref[...], dimension_numbers=nt,
                           preferred_element_type=jnp.float32)
    d_l = jnp.maximum(lsq_col_ref[...] + lsq_row_ref[...] - 2.0 * mm_l, _CLAMP)
    d_l = jnp.where(diag, _CLAMP, d_l)

    mm_b = lax.dot_general(bh_blk_ref[...], bh_all_ref[...], dimension_numbers=nt,
                           preferred_element_type=jnp.float32)
    d_b = jnp.maximum(bsq_col_ref[...] + bsq_row_ref[...] - 2.0 * mm_b, _CLAMP)
    d_b = jnp.where(diag, _CLAMP, d_b)

    dq = d_l + batch_rate * d_b
    dis_q_ref[...] = dq

    # rho = 0 (scalar), sigma = 1 -> dist_rho = dis_Q (already >= 1e-22; the
    # torch "dist_rho[dist_rho < 0] = 0" is a no-op here).
    qpre = _similarity_folded(dq, v, gamma, pw)
    q = 2.0 * qpre - qpre * qpre
    q_ref[...] = q

    p = p_ref[...]
    bce = -(p * jnp.log(q + _EPS) + (1.0 - p) * jnp.log(1.0 - q + _EPS))
    loss_ref[0] = jnp.sum(bce)


def similarity_Q_and_loss(latent, batch_hot, P, *, v, gamma, pw, batch_rate):
    m, d_lat = latent.shape
    n_b = batch_hot.shape[1]
    lsq = jnp.sum(latent * latent, axis=1)
    bsq = jnp.sum(batch_hot * batch_hot, axis=1)
    tm = _pick_row_tile(m, row_bytes=m * 4)
    nb = m // tm
    kern = functools.partial(_q_loss_kernel, v=float(v), gamma=float(gamma),
                             pw=pw, batch_rate=float(batch_rate))
    dis_q, q, loss_parts = pl.pallas_call(
        kern,
        grid=(nb,),
        out_shape=(jax.ShapeDtypeStruct((m, m), jnp.float32),      # dis_Q
                   jax.ShapeDtypeStruct((m, m), jnp.float32),      # Q
                   jax.ShapeDtypeStruct((nb,), jnp.float32)),      # loss partials
        in_specs=[
            pl.BlockSpec((tm, d_lat), lambda i: (i, 0)),   # latent rows of stripe
            pl.BlockSpec((m, d_lat), lambda i: (0, 0)),    # all latent rows (RHS)
            pl.BlockSpec((tm, 1), lambda i: (i, 0)),       # ||latent||^2 rows
            pl.BlockSpec((1, m), lambda i: (0, 0)),        # ||latent||^2 row vector
            pl.BlockSpec((tm, n_b), lambda i: (i, 0)),     # batch_hot rows of stripe
            pl.BlockSpec((m, n_b), lambda i: (0, 0)),      # all batch_hot rows
            pl.BlockSpec((tm, 1), lambda i: (i, 0)),       # ||batch_hot||^2 rows
            pl.BlockSpec((1, m), lambda i: (0, 0)),        # ||batch_hot||^2 row vec
            pl.BlockSpec((tm, m), lambda i: (i, 0)),       # P stripe (fused loss)
        ],
        out_specs=(
            pl.BlockSpec((tm, m), lambda i: (i, 0)),
            pl.BlockSpec((tm, m), lambda i: (i, 0)),
            pl.BlockSpec((1,), lambda i: (i,), memory_space=pltpu.MemorySpace.SMEM),
        ),
        compiler_params=pltpu.CompilerParams(
            dimension_semantics=("parallel",),
            vmem_limit_bytes=48 * 1024 * 1024,
        ),
    )(latent, latent, lsq[:, None], lsq[None, :],
      batch_hot, batch_hot, bsq[:, None], bsq[None, :], P)
    loss = jnp.sum(loss_parts) / (float(m) * float(m))
    return dis_q, q, loss


# ----------------------------------------------------------------------------
# MyLoss.forward equivalent
# ----------------------------------------------------------------------------
def my_loss_forward(input_data, latent_data, batch_hot, rho, sigma, v_latent, *,
                    v_input=100.0, aug_near_rate=10000.0, batch_rate=10000.0, pw=2):
    gamma_input = cal_gamma(float(v_input))
    gamma_latent = cal_gamma(float(v_latent))

    n = input_data.shape[0] // 2
    data = input_data[:n]

    dis_P, nnd_col = dist_p_and_nnd(data, aug_near_rate)
    P = similarity_P(dis_P, nnd_col, rho, sigma,
                     v=float(v_input), gamma=gamma_input, pw=pw)
    dis_Q, Q, loss_ce = similarity_Q_and_loss(
        latent_data, batch_hot, P, v=float(v_latent), gamma=gamma_latent,
        pw=pw, batch_rate=batch_rate)
    return loss_ce, dis_P, dis_Q, P, Q


# ----------------------------------------------------------------------------
# pure-JAX reference (op-for-op transcription of the PyTorch module)
# ----------------------------------------------------------------------------
def _reference_forward(input_data, latent_data, batch_hot, rho, sigma, v_latent, *,
                       v_input=100.0, aug_near_rate=10000.0, batch_rate=10000.0, pw=2):
    def dist_sq(x):
        xx = jnp.sum(x * x, axis=1, keepdims=True)
        d = jnp.maximum(xx + xx.T - 2.0 * (x @ x.T), _CLAMP)
        return jnp.where(jnp.eye(x.shape[0], dtype=bool), _CLAMP, d)

    def sim(dist, rho_, sigma_, gamma, v):
        if rho_ is None:
            dist_rho = dist
        else:
            dist_rho = jnp.maximum((dist - rho_) / sigma_, 0.0)
        dist_rho = jnp.maximum(dist_rho, 0.0)
        if v > 500:
            pij = jnp.power(jnp.exp(-dist_rho), pw)
        else:
            pij = jnp.power(
                gamma * jnp.power(1.0 + dist_rho / v, -(v + 1.0) / 2.0)
                * math.sqrt(2 * 3.14), pw)
        return pij + pij.T - pij * pij.T

    dis_bh = dist_sq(batch_hot)
    n = input_data.shape[0] // 2
    data = input_data[:n]
    dis_p = dist_sq(data)
    masked = jnp.where(jnp.eye(n, dtype=bool), jnp.max(dis_p) + 1.0, dis_p)
    nnd = jnp.min(masked, axis=0) / aug_near_rate
    dis_input = jnp.concatenate(
        [jnp.concatenate([dis_p, dis_p + nnd[:, None]], axis=0),
         jnp.concatenate([dis_p + nnd[None, :],
                          dis_p + nnd[None, :] + nnd[:, None]], axis=0)], axis=1)
    P = sim(dis_input, rho, sigma, cal_gamma(float(v_input)), float(v_input))
    dis_q = dist_sq(latent_data) + batch_rate * dis_bh
    Q = sim(dis_q, None, None, cal_gamma(float(v_latent)), float(v_latent))
    loss = jnp.mean(-(P * jnp.log(Q + _EPS) + (1.0 - P) * jnp.log(1.0 - Q + _EPS)))
    return loss, dis_p, dis_q, P, Q


# TODO(synk): non-euclidean metrics (poincare / hyperboloid / cosine branches
# of _DistanceSquared) are not used by the default forward and not implemented.

if __name__ == "__main__":
    key = jax.random.PRNGKey(0)
    k1, k2, k3, k4, k5 = jax.random.split(key, 5)

    two_n = 16      # full batch (2N); forward splits into N = 8 for dis_P
    d_in = 32       # input feature dim
    d_lat = 8       # latent feature dim
    n_batches = 4   # one-hot batch indicator width

    input_data = jax.random.normal(k1, (two_n, d_in), dtype=jnp.float32)
    latent_data = jax.random.normal(k2, (two_n, d_lat), dtype=jnp.float32)
    batch_ids = jax.random.randint(k3, (two_n,), 0, n_batches)
    batch_hot = jax.nn.one_hot(batch_ids, n_batches, dtype=jnp.float32)
    rho = jax.random.uniform(k4, (two_n, 1), dtype=jnp.float32, minval=0.0, maxval=0.5)
    sigma = jax.random.uniform(k5, (two_n, 1), dtype=jnp.float32, minval=0.5, maxval=2.0)

    v_input = 100.0   # MyLoss(v_input=100)
    v_latent = 100.0  # forward arg

    loss, dis_P, dis_Q, P, Q = my_loss_forward(
        input_data, latent_data, batch_hot, rho, sigma, v_latent, v_input=v_input)
    jax.block_until_ready((loss, dis_P, dis_Q, P, Q))

    assert dis_P.shape == (two_n // 2, two_n // 2)
    assert dis_Q.shape == (two_n, two_n)
    assert P.shape == (two_n, two_n) and Q.shape == (two_n, two_n)
    assert bool(jnp.isfinite(loss))

    # correctness self-check against the straight jnp transcription
    r_loss, r_disP, r_disQ, r_P, r_Q = _reference_forward(
        input_data, latent_data, batch_hot, rho, sigma, v_latent, v_input=v_input)
    np.testing.assert_allclose(np.asarray(dis_P), np.asarray(r_disP), rtol=1e-3, atol=1e-2)
    np.testing.assert_allclose(np.asarray(dis_Q), np.asarray(r_disQ), rtol=1e-3, atol=1e-2)
    np.testing.assert_allclose(np.asarray(P), np.asarray(r_P), rtol=5e-3, atol=1e-5)
    np.testing.assert_allclose(np.asarray(Q), np.asarray(r_Q), rtol=5e-3, atol=1e-5)
    np.testing.assert_allclose(float(loss), float(r_loss), rtol=5e-3, atol=1e-6)

    print("KERNEL_OK")
</pallas_src>

<mosaic_0001>
module attributes {stable_mosaic.version = 11 : i64} {
  func.func @_dist_nnd_kernel(%arg0: i32, %arg1: memref<8x32xf32, #tpu.memory_space<vmem>>, %arg2: memref<8x32xf32, #tpu.memory_space<vmem>>, %arg3: memref<8x1xf32, #tpu.memory_space<vmem>>, %arg4: memref<1x8xf32, #tpu.memory_space<vmem>>, %arg5: memref<8x8xf32, #tpu.memory_space<vmem>>, %arg6: memref<8x1xf32, #tpu.memory_space<vmem>>) attributes {dimension_semantics = [#tpu.dimension_semantics<parallel>], iteration_bounds = array<i64: 1>, scalar_prefetch = 0 : i64, scratch_operands = 0 : i64, tpu.core_type = #tpu.core_type<tc>, window_params = [{transform_indices = @transform_0, window_bounds = array<i64: 8, 32>}, {pipeline_mode = #tpu.pipeline_mode<synchronous>, transform_indices = @transform_1, window_bounds = array<i64: 8, 32>}, {transform_indices = @transform_2, window_bounds = array<i64: 8, 1>}, {pipeline_mode = #tpu.pipeline_mode<synchronous>, transform_indices = @transform_3, window_bounds = array<i64: 1, 8>}, {transform_indices = @transform_4, window_bounds = array<i64: 8, 8>}, {transform_indices = @transform_5, window_bounds = array<i64: 8, 1>}]} {
    %c0 = arith.constant 0 : index
    %c0_0 = arith.constant 0 : index
    %0 = vector.load %arg1[%c0, %c0_0] : memref<8x32xf32, #tpu.memory_space<vmem>>, vector<8x32xf32>
    %c0_1 = arith.constant 0 : index
    %c0_2 = arith.constant 0 : index
    %1 = vector.load %arg2[%c0_1, %c0_2] : memref<8x32xf32, #tpu.memory_space<vmem>>, vector<8x32xf32>
    %cst = arith.constant dense<0.000000e+00> : vector<8x8xf32>
    %2 = tpu.matmul %0, %1, %cst {dimension_numbers = #tpu.dot_dimension_numbers<[1], [1], [0], [0], [0, 0, 1, 0], [], []>} : vector<8x32xf32>, vector<8x32xf32>, vector<8x8xf32> -> vector<8x8xf32>
    %c0_3 = arith.constant 0 : index
    %c0_4 = arith.constant 0 : index
    %3 = vector.load %arg3[%c0_3, %c0_4] : memref<8x1xf32, #tpu.memory_space<vmem>>, vector<8x1xf32>
    %c0_5 = arith.constant 0 : index
    %c0_6 = arith.constant 0 : index
    %4 = vector.load %arg4[%c0_5, %c0_6] : memref<1x8xf32, #tpu.memory_space<vmem>>, vector<1x8xf32>
    %5 = vector.broadcast %3 : vector<8x1xf32> to vector<8x8xf32>
    %6 = vector.broadcast %4 : vector<1x8xf32> to vector<8x8xf32>
    %7 = arith.addf %5, %6 : vector<8x8xf32>
    %cst_7 = arith.constant 2.000000e+00 : f32
    %8 = vector.broadcast %cst_7 : f32 to vector<8x8xf32>
    %9 = arith.mulf %8, %2 : vector<8x8xf32>
    %10 = arith.subf %7, %9 : vector<8x8xf32>
    %cst_8 = arith.constant 1.000000e-22 : f32
    %11 = vector.broadcast %cst_8 : f32 to vector<8x8xf32>
    %12 = arith.maximumf %10, %11 : vector<8x8xf32>
    %c8_i32 = arith.constant 8 : i32
    %13 = arith.muli %arg0, %c8_i32 : i32
    %14 = tpu.iota {dimensions = array<i32: 0>} : vector<8x8xi32>
    %15 = vector.broadcast %13 : i32 to vector<8x8xi32>
    %16 = arith.addi %15, %14 : vector<8x8xi32>
    %17 = tpu.iota {dimensions = array<i32: 1>} : vector<8x8xi32>
    %18 = arith.cmpi eq, %16, %17 : vector<8x8xi32>
    %cst_9 = arith.constant 1.000000e-22 : f32
    %19 = vector.broadcast %cst_9 : f32 to vector<8x8xf32>
    %20 = arith.select %18, %19, %12 : vector<8x8xi1>, vector<8x8xf32>
    %c0_10 = arith.constant 0 : index
    %c0_11 = arith.constant 0 : index
    %21 = vector.load %arg5[%c0_10, %c0_11] : memref<8x8xf32, #tpu.memory_space<vmem>>, vector<8x8xf32>
    tpu.vector_store %arg5[%c0_10, %c0_11], %20 {strides = array<i32>} : memref<8x8xf32, #tpu.memory_space<vmem>>, vector<8x8xf32>,
    %cst_12 = arith.constant 3.000000e+38 : f32
    %22 = vector.broadcast %cst_12 : f32 to vector<8x8xf32>
    %23 = arith.select %18, %22, %12 : vector<8x8xi1>, vector<8x8xf32>
    %cst_13 = arith.constant dense<0x7F800000> : vector<8xf32>
    %24 = vector.multi_reduction <minimumf>, %23, %cst_13 [1] : vector<8x8xf32> to vector<8xf32>
    %25 = vector.shape_cast %24 : vector<8xf32> to vector<8x1xf32>
    %cst_14 = arith.constant 1.000000e+04 : f32
    %26 = vector.broadcast %cst_14 : f32 to vector<8x1xf32>
    %27 = arith.divf %25, %26 : vector<8x1xf32>
    %c0_15 = arith.constant 0 : index
    %c0_16 = arith.constant 0 : index
    %28 = vector.load %arg6[%c0_15, %c0_16] : memref<8x1xf32, #tpu.memory_space<vmem>>, vector<8x1xf32>
    tpu.vector_store %arg6[%c0_15, %c0_16], %27 {strides = array<i32>} : memref<8x1xf32, #tpu.memory_space<vmem>>, vector<8x1xf32>,
    return
  }
  func.func @transform_0(%arg0: i32) -> (i32, i32) {
    %c0_i32 = arith.constant 0 : i32
    %c0_i32_0 = arith.constant 0 : i32
    return %arg0, %c0_i32 : i32, i32
  }
  func.func @transform_1(%arg0: i32) -> (i32, i32) {
    %c0_i32 = arith.constant 0 : i32
    %c0_i32_0 = arith.constant 0 : i32
    %c0_i32_1 = arith.constant 0 : i32
    return %c0_i32, %c0_i32_0 : i32, i32
  }
  func.func @transform_2(%arg0: i32) -> (i32, i32) {
    %c0_i32 = arith.constant 0 : i32
    %c0_i32_0 = arith.constant 0 : i32
    return %arg0, %c0_i32 : i32, i32
  }
  func.func @transform_3(%arg0: i32) -> (i32, i32) {
    %c0_i32 = arith.constant 0 : i32
    %c0_i32_0 = arith.constant 0 : i32
    %c0_i32_1 = arith.constant 0 : i32
    return %c0_i32, %c0_i32_0 : i32, i32
  }
  func.func @transform_4(%arg0: i32) -> (i32, i32) {
    %c0_i32 = arith.constant 0 : i32
    %c0_i32_0 = arith.constant 0 : i32
    return %arg0, %c0_i32 : i32, i32
  }
  func.func @transform_5(%arg0: i32) -> (i32, i32) {
    %c0_i32 = arith.constant 0 : i32
    %c0_i32_0 = arith.constant 0 : i32
    return %arg0, %c0_i32 : i32, i32
  }
}

</mosaic_0001>

<bundles_post_ra>
// kernel: tpu_custom_call.1
= control target key start
LH: loop header
LB: loop body
LE: loop exit
PB: predicated region body
PF: predicated region fallthrough
CT: control target
= control target key end

     0   :  { %11 = vsyncpa [#allocation3], 0  ;;  %s301_s0 = inlined_call_operand.vmem [shape: f32[8,32], index: 0, kind: input, shape index: {}]   ;;  %s302_s1 = inlined_call_operand.hbm [shape: f32[8,32], index: 1, kind: input, shape index: {}]   ;;  %s303_s2 = inlined_call_operand.vmem [shape: f32[8,1], index: 2, kind: input, shape index: {}]   ;;  %s304_s3 = inlined_call_operand.vmem [shape: f32[1,8], index: 3, kind: input, shape index: {}]   ;;  %s305_s4 = inlined_call_operand.hbm [shape: f32[8,8], index: 4, kind: output, shape index: {0}]   ;;  %s306_s5 = inlined_call_operand.vmem [shape: f32[8,1], index: 5, kind: output, shape index: {1}]  }
   0x1   :  { %12 = vsyncpa [#allocation4], 0  ;;  %s230_s18 = smov [#allocation2]   ;;  %s182_s22 = scalar_lea.hbm %s302_s1, 128 }
   0x2   :  { %s21_s19 = sshll.u32 %s230_s18, 4  ;;  %p183_p0 = scmp.ne.s32.totalorder %s302_s1, %s182_s22  ;;  %s22_s19 = int_to_ptr.vmem [resolvable:$true] %s21_s19 }
   0x3   :  { %p186_p1 = scmp.lt.u32.totalorder %s182_s22, %s302_s1 }
   0x5   :  { %p188_p2 = pnand %p186_p1, %p183_p0 }
   0x7   :  { %191 = shalt.err (!%p188_p2)
}
   0x8   :  { %s192_s27 = scalar_lea.vmem %s22_s19, 128  ;;  %p197_p4 = scmp.lt.s32.totalorder %s22_s19, %s22_s19 }
   0x9   :  { %p193_p3 = scmp.ne.s32.totalorder %s22_s19, %s192_s27  ;;  %p198_p5 = scmp.lt.s32.totalorder %s192_s27, %s192_s27 }
   0xb   :  { %p199_p6 = por %p198_p5, %p197_p4 }
   0xd   :  { %p200_p7 = pnand %p199_p6, %p193_p3 }
   0xf   :  { %203 = shalt.err (!%p200_p7)
}
  0x10   :  { %24 = dma.hbm_to_vmem [thread:$0]  %s302_s1, 128, %s22_s19, [#allocation3]  }
  0x11   :  { %226 = dma.done.wait [#allocation3], 128  }
  0x12   :  { %227 = vsyncadd [#allocation3], 4294967168  ;;  %v231_v0 = vmov 0.0   ;;  %vm232_vm0 = vmmov 0   ;;  %v233_v1 = vmov 0   ;;  %vm34_vm1 = vcmask 261120  }
  0x13   :  { %171 = vmatprep.subr.mxu0 %v231_v0  ;;  %173 = vmatprep.mubr.msk.f32.mxu0 %vm232_vm0, %v231_v0  ;;  %v33_v2 = vld [vmem:[#allocation2] sm:$0xff]  ;;  %v129_v7 = vlaneseq  ;;  %vm137_vm3 = vcmask 64512  }
  0x14   :  { %181 = vset.pattern.permute.xlu0 %v233_v1  ;;  %v111_v3 = vld [vmem:[%s303_s2] sm:$0xff]  ;;  %172 = vmatpush3.xpose.msk.msra.mxu0 %vm34_vm1, %v33_v2 }
  0x15   :  { %v32_v4 = vld [vmem:[%s301_s0] sm:$0xff]  ;;  %115 = vperm.xlu0 %181, %v111_v3   ;;  %v130_v10 = vshrl.u32 %v129_v7, 7  ;;  %v134_v11 = vand.u32 127, %v129_v7  ;;  %s234_s0 = smov [#allocation5]  }
  0x16   :  { %v168_v5 = vld [vmem:[%s304_s3] ss:$0 sm:$0xff]  ;;  %s153_s2 = sshll.u32 %s234_s0, 4  ;;  %s154_s2 = int_to_ptr.vmem [resolvable:$true] %s153_s2 }
  0x17   :  { %174 = vmatmul.mubr.msk.f32.vlgmr.msra.gmra.mrb[0].mxu0 %vm34_vm1, %v32_v4  ;;  %vm135_vm2 = vcmp.eq.s32.totalorder %v130_v10, %v134_v11  ;;  %s204_s3 = scalar_lea.vmem %s154_s2, 128  ;;  %p209_p9 = scmp.lt.s32.totalorder %s154_s2, %s154_s2 }
  0x18   :  { %p205_p8 = scmp.ne.s32.totalorder %s154_s2, %s204_s3  ;;  %p210_p10 = scmp.lt.s32.totalorder %s204_s3, %s204_s3 }
  0x1a   :  { %p211_p11 = por %p210_p10, %p209_p9 }
  0x1c   :  { %p212_p12 = pnand %p211_p11, %p205_p8 }
  0x94   :  { %v116_v6 = vpop.permute.xlu0 %115 }
  0x95   :  { %v124_v8 = vadd.f32 %v168_v5, %v116_v6 }
  0xea   :  { %v107_v9 = vpop.f32.mrb[0].mxu0 }
  0xeb   :  { %v125_v12 = vmul.f32 2.0, %v107_v9  ;;  %v175_v13 = vpop.f32.mrb[1].mxu0 }
  0xed   :  { %v126_v14 = vsub.f32 %v124_v8, %v125_v12 }
  0xef   :  { %v127_v15 = vmax.f32 %v126_v14, 1e-22 }
  0xf1   :  { %v139_v16 = vsel %vm135_vm2, 3e+38, %v127_v15  ;;  %v136_v17 = vsel %vm135_vm2, 1e-22, %v127_v15 }
  0xf2   :  { %v140_v18 = vsel %vm137_vm3, %v139_v16, inf  ;;  %138 = vst.msk [vmem:[#allocation5] sm:$0xff] %vm137_vm3, %v136_v17 }
  0xf3   :  { %141 = vmin.xlane.f32.xlu0 %v140_v18 }
  0xf4   :  { %215 = shalt.err (!%p212_p12)
}
  0xf5   :  { %s216_s12 = scalar_lea.hbm %s305_s4, 128 }
  0xf6   :  { %p217_p13 = scmp.ne.s32.totalorder %s305_s4, %s216_s12  ;;  %p220_p0 = scmp.lt.u32.totalorder %s216_s12, %s305_s4 }
  0xf8   :  { %p222_p1 = pnand %p220_p0, %p217_p13 }
  0xfa   :  { %225 = shalt.err (!%p222_p1)
}
  0xfb   :  { %156 = dma.vmem_to_hbm [thread:$0]  %s154_s2, 128, %s305_s4, [#allocation4]   ;;  %vm145_vm4 = vcmask 7168  }
 0x180   :  { %v142_v19 = vpop.xlane.xlu0 %141 }
 0x181   :  { %v144_v20 = vmul.f32 0.0001, %v142_v19 }
 0x183   :  { %146 = vst.msk [vmem:[%s306_s5] sm:$0xff] %vm145_vm4, %v144_v20 }
 0x184   :  { %228 = dma.done.wait [#allocation4], 128  }
 0x185   :  { %229 = vsyncadd [#allocation4], 4294967168 }
 0x186   :  { %164 = vsyncpa [#allocation3], 1 }
 0x187   :  { %165 = vsyncpa [#allocation4], 1 }

</bundles_post_ra>
